<compile_context>
chip_gen: v5e
topology: v5e:2x2
jax: 0.10.0
libtpu: 0.0.40
codegen_flags: <defaults>
</compile_context>

<pallas_src>
import functools
import math

import jax
import jax.numpy as jnp
from jax.experimental import pallas as pl
from jax.experimental.pallas import tpu as pltpu

LN_EPS = 1e-5


def _pick_row_tile(M, target=512):
    """Largest power-of-two row tile <= target that divides M (falls back to M)."""
    t = target
    while t >= 8:
        if t <= M and M % t == 0:
            return t
        t //= 2
    return M


def _layernorm(x, gamma, beta):
    mu = jnp.mean(x, axis=-1, keepdims=True)
    xc = x - mu
    var = jnp.mean(xc * xc, axis=-1, keepdims=True)
    return xc * jax.lax.rsqrt(var + LN_EPS) * gamma + beta


# -------------------- Kernel 1: LayerNorm1 + fused QKV projection ------------
def ln1_qkv_kernel(x_ref, g_ref, be_ref, w_ref, bias_ref, q_ref, k_ref, v_ref,
                   *, embed_dim):
    x = x_ref[...]                                            # (tm, E)
    xn = _layernorm(x, g_ref[...], be_ref[...])
    y = jnp.dot(xn, w_ref[...], preferred_element_type=jnp.float32) + bias_ref[...]
    E = embed_dim
    q_ref[...] = y[:, :E]
    k_ref[...] = y[:, E:2 * E]
    v_ref[...] = y[:, 2 * E:]


def ln1_qkv(x2d, gamma, beta, wqkv, bqkv, tm):
    M, E = x2d.shape
    row_spec = pl.BlockSpec((tm, E), lambda i: (i, 0))
    const_vec = pl.BlockSpec((1, E), lambda i: (0, 0))
    out_sds = jax.ShapeDtypeStruct((M, E), jnp.float32)
    return pl.pallas_call(
        functools.partial(ln1_qkv_kernel, embed_dim=E),
        out_shape=(out_sds, out_sds, out_sds),
        grid_spec=pltpu.PrefetchScalarGridSpec(
            num_scalar_prefetch=0,
            grid=(M // tm,),
            in_specs=[row_spec,
                      const_vec,
                      const_vec,
                      pl.BlockSpec((E, 3 * E), lambda i: (0, 0)),
                      pl.BlockSpec((1, 3 * E), lambda i: (0, 0))],
            out_specs=(row_spec, row_spec, row_spec),
        ),
        compiler_params=pltpu.CompilerParams(
            dimension_semantics=("parallel",)),
        cost_estimate=pl.CostEstimate(
            flops=2 * M * E * 3 * E,
            transcendentals=M,
            bytes_accessed=4 * (M * E + E * 3 * E + 5 * E + 3 * M * E)),
    )(x2d, gamma.reshape(1, E), beta.reshape(1, E), wqkv, bqkv.reshape(1, 3 * E))


# -------------------- Kernel 2: multi-head attention (per batch) -------------
def attn_kernel(q_ref, k_ref, v_ref, o_ref, *, heads, head_dim):
    q = q_ref[0]                                              # (S, E)
    k = k_ref[0]
    v = v_ref[0]
    for h in range(heads):                                    # static unroll
        lo = h * head_dim
        hi = lo + head_dim
        qh = q[:, lo:hi]
        kh = k[:, lo:hi]
        vh = v[:, lo:hi]
        # Q @ K^T without materializing a transpose (contract last dims).
        s = jax.lax.dot_general(qh, kh, (((1,), (1,)), ((), ())),
                                preferred_element_type=jnp.float32)   # (S, S)
        m = jnp.max(s, axis=-1, keepdims=True)
        e = jnp.exp(s - m)
        denom = jnp.sum(e, axis=-1, keepdims=True)
        p = e * pl.reciprocal(denom, approx=False)            # softmax probs
        o_ref[0, :, lo:hi] = jnp.dot(p, vh, preferred_element_type=jnp.float32)


def attention_core(q, k, v, heads):
    B, S, E = q.shape
    D = E // heads
    blk = pl.BlockSpec((1, S, E), lambda b: (b, 0, 0))
    return pl.pallas_call(
        functools.partial(attn_kernel, heads=heads, head_dim=D),
        out_shape=jax.ShapeDtypeStruct((B, S, E), jnp.float32),
        grid_spec=pltpu.PrefetchScalarGridSpec(
            num_scalar_prefetch=0,
            grid=(B,),
            in_specs=[blk, blk, blk],
            out_specs=blk,
        ),
        compiler_params=pltpu.CompilerParams(
            dimension_semantics=("parallel",)),
        cost_estimate=pl.CostEstimate(
            flops=4 * B * heads * S * S * D,
            transcendentals=B * heads * S * S,
            bytes_accessed=4 * 4 * B * S * E),
    )(q, k, v)


# -------------------- Kernel 3: residual add + LayerNorm2 --------------------
def add_ln_kernel(a_ref, r_ref, g_ref, be_ref, sum_ref, y_ref):
    s = a_ref[...] + r_ref[...]
    sum_ref[...] = s
    y_ref[...] = _layernorm(s, g_ref[...], be_ref[...])


def add_ln(attn2d, x2d, gamma, beta, tm):
    M, E = attn2d.shape
    row_spec = pl.BlockSpec((tm, E), lambda i: (i, 0))
    const_vec = pl.BlockSpec((1, E), lambda i: (0, 0))
    out_sds = jax.ShapeDtypeStruct((M, E), jnp.float32)
    return pl.pallas_call(
        add_ln_kernel,
        out_shape=(out_sds, out_sds),
        grid_spec=pltpu.PrefetchScalarGridSpec(
            num_scalar_prefetch=0,
            grid=(M // tm,),
            in_specs=[row_spec, row_spec, const_vec, const_vec],
            out_specs=(row_spec, row_spec),
        ),
        compiler_params=pltpu.CompilerParams(
            dimension_semantics=("parallel",)),
    )(attn2d, x2d, gamma.reshape(1, E), beta.reshape(1, E))


# -------------------- Kernel 4: FeedForward (fc1-GELU-fc2) + residual --------
def ffn_kernel(x_ref, r_ref, w1_ref, b1_ref, w2_ref, b2_ref, o_ref):
    x = x_ref[...]                                            # (tm, E)
    h = jnp.dot(x, w1_ref[...], preferred_element_type=jnp.float32) + b1_ref[...]
    c = math.sqrt(2.0 / math.pi)
    h = 0.5 * h * (1.0 + jnp.tanh(c * (h + 0.044715 * h * h * h)))   # GELU (tanh)
    o_ref[...] = (jnp.dot(h, w2_ref[...], preferred_element_type=jnp.float32)
                  + b2_ref[...] + r_ref[...])


def ffn_residual(xn2d, res2d, w1, b1, w2, b2, tm):
    M, E = xn2d.shape
    F = w1.shape[1]
    row_spec = pl.BlockSpec((tm, E), lambda i: (i, 0))
    return pl.pallas_call(
        ffn_kernel,
        out_shape=jax.ShapeDtypeStruct((M, E), jnp.float32),
        grid_spec=pltpu.PrefetchScalarGridSpec(
            num_scalar_prefetch=0,
            grid=(M // tm,),
            in_specs=[row_spec,
                      row_spec,
                      pl.BlockSpec((E, F), lambda i: (0, 0)),
                      pl.BlockSpec((1, F), lambda i: (0, 0)),
                      pl.BlockSpec((F, E), lambda i: (0, 0)),
                      pl.BlockSpec((1, E), lambda i: (0, 0))],
            out_specs=row_spec,
        ),
        compiler_params=pltpu.CompilerParams(
            dimension_semantics=("parallel",)),
        cost_estimate=pl.CostEstimate(
            flops=4 * M * E * F,
            transcendentals=M * F,
            bytes_accessed=4 * (2 * M * E + 2 * E * F + E + F + M * E)),
    )(xn2d, res2d, w1, b1.reshape(1, F), w2, b2.reshape(1, E))


# ------------------------------ Module wrapper -------------------------------
def transformer_block_forward(x, params, heads):
    B, S, E = x.shape
    assert E % heads == 0
    M = B * S
    tm = _pick_row_tile(M)

    x2d = x.reshape(M, E)

    # Fused QKV weights (torch weights stored pre-transposed as (in, out)).
    wqkv = jnp.concatenate([params["wq"], params["wk"], params["wv"]], axis=1)
    bqkv = jnp.concatenate([params["bq"], params["bk"], params["bv"]])

    # --- LayerNorm1 + QKV projection (activation == Identity in reference) ---
    q2d, k2d, v2d = ln1_qkv(x2d, params["ln1_g"], params["ln1_b"], wqkv, bqkv, tm)

    # --- Multi-head attention; head split handled inside the kernel ----------
    attn = attention_core(q2d.reshape(B, S, E),
                          k2d.reshape(B, S, E),
                          v2d.reshape(B, S, E), heads)

    # --- residual add + LayerNorm2 -------------------------------------------
    res2, xn2 = add_ln(attn.reshape(M, E), x2d, params["ln2_g"], params["ln2_b"], tm)

    # --- FeedForward + residual ----------------------------------------------
    out2d = ffn_residual(xn2, res2, params["w1"], params["b1"],
                         params["w2"], params["b2"], tm)
    return out2d.reshape(B, S, E)


def init_params(key, embed_dim, forward_expansion=1):
    ff_dim = embed_dim * forward_expansion
    bound_e = 1.0 / math.sqrt(embed_dim)
    bound_f = 1.0 / math.sqrt(ff_dim)
    ks = jax.random.split(key, 10)
    shape_w = (embed_dim, embed_dim)  # stored as (in, out) == torch W.T
    return {
        "ln1_g": jnp.ones((embed_dim,), jnp.float32),
        "ln1_b": jnp.zeros((embed_dim,), jnp.float32),
        "wq": jax.random.uniform(ks[0], shape_w, jnp.float32, -bound_e, bound_e),
        "wk": jax.random.uniform(ks[1], shape_w, jnp.float32, -bound_e, bound_e),
        "wv": jax.random.uniform(ks[2], shape_w, jnp.float32, -bound_e, bound_e),
        "bq": jax.random.uniform(ks[3], (embed_dim,), jnp.float32, -bound_e, bound_e),
        "bk": jax.random.uniform(ks[4], (embed_dim,), jnp.float32, -bound_e, bound_e),
        "bv": jax.random.uniform(ks[5], (embed_dim,), jnp.float32, -bound_e, bound_e),
        "ln2_g": jnp.ones((embed_dim,), jnp.float32),
        "ln2_b": jnp.zeros((embed_dim,), jnp.float32),
        "w1": jax.random.uniform(ks[6], (embed_dim, ff_dim), jnp.float32, -bound_e, bound_e),
        "b1": jax.random.uniform(ks[7], (ff_dim,), jnp.float32, -bound_e, bound_e),
        "w2": jax.random.uniform(ks[8], (ff_dim, embed_dim), jnp.float32, -bound_f, bound_f),
        "b2": jax.random.uniform(ks[9], (embed_dim,), jnp.float32, -bound_f, bound_f),
    }


# ------------------------------ Pure-JAX reference ---------------------------
def reference(x, p, heads):
    B, S, E = x.shape
    D = E // heads

    def ln(t, g, b):
        mu = jnp.mean(t, axis=-1, keepdims=True)
        var = jnp.mean((t - mu) ** 2, axis=-1, keepdims=True)
        return (t - mu) / jnp.sqrt(var + LN_EPS) * g + b

    res = x
    h = ln(x, p["ln1_g"], p["ln1_b"])
    q = h @ p["wq"] + p["bq"]
    k = h @ p["wk"] + p["bk"]
    v = h @ p["wv"] + p["bv"]

    def rh(t):
        t = t.reshape(B, S, heads, D)
        return jnp.transpose(t, (0, 2, 1, 3)).reshape(B * heads, S, D)

    qh, kh, vh = rh(q), rh(k), rh(v)
    s = jax.nn.softmax(jnp.einsum("bqd,bkd->bqk", qh, kh), axis=-1)  # no 1/sqrt(D), per module
    o = jnp.einsum("bqk,bkd->bqd", s, vh)
    o = jnp.transpose(o.reshape(B, heads, S, D), (0, 2, 1, 3)).reshape(B, S, E)
    out = o + res
    res2 = out
    h2 = ln(out, p["ln2_g"], p["ln2_b"])
    f = h2 @ p["w1"] + p["b1"]
    c = math.sqrt(2.0 / math.pi)
    f = 0.5 * f * (1.0 + jnp.tanh(c * (f + 0.044715 * f ** 3)))
    f = f @ p["w2"] + p["b2"]
    return f + res2


if __name__ == "__main__":
    B, S, E, H = 2, 8, 32, 4   # small shapes consistent with (batch, seq, embed)
    key = jax.random.PRNGKey(0)
    k_x, k_p = jax.random.split(key)
    x = jax.random.normal(k_x, (B, S, E), jnp.float32)
    params = init_params(k_p, E, forward_expansion=1)

    fwd = jax.jit(transformer_block_forward, static_argnames=("heads",))
    out = fwd(x, params, heads=H)
    jax.block_until_ready(out)

    out_ref = reference(x, params, H)
    assert out.shape == (B, S, E)
    assert jnp.allclose(out, out_ref, atol=1e-4, rtol=1e-4), (
        float(jnp.max(jnp.abs(out - out_ref))))

    print("KERNEL_OK")
</pallas_src>

<mosaic_0001>
module attributes {stable_mosaic.version = 11 : i64} {
  func.func @ln1_qkv_kernel(%arg0: i32, %arg1: memref<16x32xf32, #tpu.memory_space<vmem>>, %arg2: memref<1x32xf32, #tpu.memory_space<vmem>>, %arg3: memref<1x32xf32, #tpu.memory_space<vmem>>, %arg4: memref<32x96xf32, #tpu.memory_space<vmem>>, %arg5: memref<1x96xf32, #tpu.memory_space<vmem>>, %arg6: memref<16x32xf32, #tpu.memory_space<vmem>>, %arg7: memref<16x32xf32, #tpu.memory_space<vmem>>, %arg8: memref<16x32xf32, #tpu.memory_space<vmem>>) attributes {dimension_semantics = [#tpu.dimension_semantics<parallel>], iteration_bounds = array<i64: 1>, scalar_prefetch = 0 : i64, scratch_operands = 0 : i64, tpu.core_type = #tpu.core_type<tc>, window_params = [{transform_indices = @transform_0, window_bounds = array<i64: 16, 32>}, {pipeline_mode = #tpu.pipeline_mode<synchronous>, transform_indices = @transform_1, window_bounds = array<i64: 1, 32>}, {pipeline_mode = #tpu.pipeline_mode<synchronous>, transform_indices = @transform_2, window_bounds = array<i64: 1, 32>}, {pipeline_mode = #tpu.pipeline_mode<synchronous>, transform_indices = @transform_3, window_bounds = array<i64: 32, 96>}, {pipeline_mode = #tpu.pipeline_mode<synchronous>, transform_indices = @transform_4, window_bounds = array<i64: 1, 96>}, {transform_indices = @transform_5, window_bounds = array<i64: 16, 32>}, {transform_indices = @transform_6, window_bounds = array<i64: 16, 32>}, {transform_indices = @transform_7, window_bounds = array<i64: 16, 32>}]} {
    %c0 = arith.constant 0 : index
    %c0_0 = arith.constant 0 : index
    %0 = vector.load %arg1[%c0, %c0_0] : memref<16x32xf32, #tpu.memory_space<vmem>>, vector<16x32xf32>
    %c0_1 = arith.constant 0 : index
    %c0_2 = arith.constant 0 : index
    %1 = vector.load %arg2[%c0_1, %c0_2] : memref<1x32xf32, #tpu.memory_space<vmem>>, vector<1x32xf32>
    %c0_3 = arith.constant 0 : index
    %c0_4 = arith.constant 0 : index
    %2 = vector.load %arg3[%c0_3, %c0_4] : memref<1x32xf32, #tpu.memory_space<vmem>>, vector<1x32xf32>
    %cst = arith.constant dense<0.000000e+00> : vector<16xf32>
    %3 = vector.multi_reduction <add>, %0, %cst [1] : vector<16x32xf32> to vector<16xf32>
    %4 = vector.shape_cast %3 : vector<16xf32> to vector<16x1xf32>
    %cst_5 = arith.constant 3.200000e+01 : f32
    %5 = vector.broadcast %cst_5 : f32 to vector<16x1xf32>
    %6 = arith.divf %4, %5 : vector<16x1xf32>
    %7 = vector.broadcast %6 : vector<16x1xf32> to vector<16x32xf32>
    %8 = arith.subf %0, %7 : vector<16x32xf32>
    %9 = arith.mulf %8, %8 : vector<16x32xf32>
    %cst_6 = arith.constant dense<0.000000e+00> : vector<16xf32>
    %10 = vector.multi_reduction <add>, %9, %cst_6 [1] : vector<16x32xf32> to vector<16xf32>
    %11 = vector.shape_cast %10 : vector<16xf32> to vector<16x1xf32>
    %cst_7 = arith.constant 3.200000e+01 : f32
    %12 = vector.broadcast %cst_7 : f32 to vector<16x1xf32>
    %13 = arith.divf %11, %12 : vector<16x1xf32>
    %cst_8 = arith.constant 9.99999974E-6 : f32
    %14 = vector.broadcast %cst_8 : f32 to vector<16x1xf32>
    %15 = arith.addf %13, %14 : vector<16x1xf32>
    %16 = math.rsqrt %15 : vector<16x1xf32>
    %17 = vector.broadcast %16 : vector<16x1xf32> to vector<16x32xf32>
    %18 = arith.mulf %8, %17 : vector<16x32xf32>
    %19 = vector.broadcast %1 : vector<1x32xf32> to vector<16x32xf32>
    %20 = arith.mulf %18, %19 : vector<16x32xf32>
    %21 = vector.broadcast %2 : vector<1x32xf32> to vector<16x32xf32>
    %22 = arith.addf %20, %21 : vector<16x32xf32>
    %c0_9 = arith.constant 0 : index
    %c0_10 = arith.constant 0 : index
    %23 = vector.load %arg4[%c0_9, %c0_10] : memref<32x96xf32, #tpu.memory_space<vmem>>, vector<32x96xf32>
    %cst_11 = arith.constant dense<0.000000e+00> : vector<16x96xf32>
    %24 = tpu.matmul %22, %23, %cst_11 {dimension_numbers = #tpu.dot_dimension_numbers<[1], [0], [0], [1], [0, 0, 1, 1], [], []>} : vector<16x32xf32>, vector<32x96xf32>, vector<16x96xf32> -> vector<16x96xf32>
    %c0_12 = arith.constant 0 : index
    %c0_13 = arith.constant 0 : index
    %25 = vector.load %arg5[%c0_12, %c0_13] : memref<1x96xf32, #tpu.memory_space<vmem>>, vector<1x96xf32>
    %26 = vector.broadcast %25 : vector<1x96xf32> to vector<16x96xf32>
    %27 = arith.addf %24, %26 : vector<16x96xf32>
    %28 = vector.extract_strided_slice %27 {offsets = [0, 0], sizes = [16, 32], strides = [1, 1]} : vector<16x96xf32> to vector<16x32xf32>
    %c0_14 = arith.constant 0 : index
    %c0_15 = arith.constant 0 : index
    %29 = vector.load %arg6[%c0_14, %c0_15] : memref<16x32xf32, #tpu.memory_space<vmem>>, vector<16x32xf32>
    tpu.vector_store %arg6[%c0_14, %c0_15], %28 {strides = array<i32>} : memref<16x32xf32, #tpu.memory_space<vmem>>, vector<16x32xf32>,
    %30 = vector.extract_strided_slice %27 {offsets = [0, 32], sizes = [16, 32], strides = [1, 1]} : vector<16x96xf32> to vector<16x32xf32>
    %c0_16 = arith.constant 0 : index
    %c0_17 = arith.constant 0 : index
    %31 = vector.load %arg7[%c0_16, %c0_17] : memref<16x32xf32, #tpu.memory_space<vmem>>, vector<16x32xf32>
    tpu.vector_store %arg7[%c0_16, %c0_17], %30 {strides = array<i32>} : memref<16x32xf32, #tpu.memory_space<vmem>>, vector<16x32xf32>,
    %32 = vector.extract_strided_slice %27 {offsets = [0, 64], sizes = [16, 32], strides = [1, 1]} : vector<16x96xf32> to vector<16x32xf32>
    %c0_18 = arith.constant 0 : index
    %c0_19 = arith.constant 0 : index
    %33 = vector.load %arg8[%c0_18, %c0_19] : memref<16x32xf32, #tpu.memory_space<vmem>>, vector<16x32xf32>
    tpu.vector_store %arg8[%c0_18, %c0_19], %32 {strides = array<i32>} : memref<16x32xf32, #tpu.memory_space<vmem>>, vector<16x32xf32>,
    return
  }
  func.func @transform_0(%arg0: i32) -> (i32, i32) {
    %c0_i32 = arith.constant 0 : i32
    %c0_i32_0 = arith.constant 0 : i32
    return %arg0, %c0_i32 : i32, i32
  }
  func.func @transform_1(%arg0: i32) -> (i32, i32) {
    %c0_i32 = arith.constant 0 : i32
    %c0_i32_0 = arith.constant 0 : i32
    %c0_i32_1 = arith.constant 0 : i32
    return %c0_i32, %c0_i32_0 : i32, i32
  }
  func.func @transform_2(%arg0: i32) -> (i32, i32) {
    %c0_i32 = arith.constant 0 : i32
    %c0_i32_0 = arith.constant 0 : i32
    %c0_i32_1 = arith.constant 0 : i32
    return %c0_i32, %c0_i32_0 : i32, i32
  }
  func.func @transform_3(%arg0: i32) -> (i32, i32) {
    %c0_i32 = arith.constant 0 : i32
    %c0_i32_0 = arith.constant 0 : i32
    %c0_i32_1 = arith.constant 0 : i32
    return %c0_i32, %c0_i32_0 : i32, i32
  }
  func.func @transform_4(%arg0: i32) -> (i32, i32) {
    %c0_i32 = arith.constant 0 : i32
    %c0_i32_0 = arith.constant 0 : i32
    %c0_i32_1 = arith.constant 0 : i32
    return %c0_i32, %c0_i32_0 : i32, i32
  }
  func.func @transform_5(%arg0: i32) -> (i32, i32) {
    %c0_i32 = arith.constant 0 : i32
    %c0_i32_0 = arith.constant 0 : i32
    return %arg0, %c0_i32 : i32, i32
  }
  func.func @transform_6(%arg0: i32) -> (i32, i32) {
    %c0_i32 = arith.constant 0 : i32
    %c0_i32_0 = arith.constant 0 : i32
    return %arg0, %c0_i32 : i32, i32
  }
  func.func @transform_7(%arg0: i32) -> (i32, i32) {
    %c0_i32 = arith.constant 0 : i32
    %c0_i32_0 = arith.constant 0 : i32
    return %arg0, %c0_i32 : i32, i32
  }
}

module attributes {stable_mosaic.version = 11 : i64} {
  func.func @attn_kernel(%arg0: i32, %arg1: memref<1x8x32xf32, #tpu.memory_space<vmem>>, %arg2: memref<1x8x32xf32, #tpu.memory_space<vmem>>, %arg3: memref<1x8x32xf32, #tpu.memory_space<vmem>>, %arg4: memref<1x8x32xf32, #tpu.memory_space<vmem>>) attributes {dimension_semantics = [#tpu.dimension_semantics<parallel>], iteration_bounds = array<i64: 2>, scalar_prefetch = 0 : i64, scratch_operands = 0 : i64, tpu.core_type = #tpu.core_type<tc>, window_params = [{transform_indices = @transform_0, window_bounds = array<i64: 1, 8, 32>}, {transform_indices = @transform_1, window_bounds = array<i64: 1, 8, 32>}, {transform_indices = @transform_2, window_bounds = array<i64: 1, 8, 32>}, {transform_indices = @transform_3, window_bounds = array<i64: 1, 8, 32>}]} {
    %c0 = arith.constant 0 : index
    %c0_0 = arith.constant 0 : index
    %c0_1 = arith.constant 0 : index
    %0 = vector.load %arg1[%c0, %c0_0, %c0_1] : memref<1x8x32xf32, #tpu.memory_space<vmem>>, vector<1x8x32xf32>
    %1 = vector.shape_cast %0 : vector<1x8x32xf32> to vector<8x32xf32>
    %c0_2 = arith.constant 0 : index
    %c0_3 = arith.constant 0 : index
    %c0_4 = arith.constant 0 : index
    %2 = vector.load %arg2[%c0_2, %c0_3, %c0_4] : memref<1x8x32xf32, #tpu.memory_space<vmem>>, vector<1x8x32xf32>
    %3 = vector.shape_cast %2 : vector<1x8x32xf32> to vector<8x32xf32>
    %c0_5 = arith.constant 0 : index
    %c0_6 = arith.constant 0 : index
    %c0_7 = arith.constant 0 : index
    %4 = vector.load %arg3[%c0_5, %c0_6, %c0_7] : memref<1x8x32xf32, #tpu.memory_space<vmem>>, vector<1x8x32xf32>
    %5 = vector.shape_cast %4 : vector<1x8x32xf32> to vector<8x32xf32>
    %6 = vector.extract_strided_slice %1 {offsets = [0, 0], sizes = [8, 8], strides = [1, 1]} : vector<8x32xf32> to vector<8x8xf32>
    %7 = vector.extract_strided_slice %3 {offsets = [0, 0], sizes = [8, 8], strides = [1, 1]} : vector<8x32xf32> to vector<8x8xf32>
    %8 = vector.extract_strided_slice %5 {offsets = [0, 0], sizes = [8, 8], strides = [1, 1]} : vector<8x32xf32> to vector<8x8xf32>
    %cst = arith.constant dense<0.000000e+00> : vector<8x8xf32>
    %9 = tpu.matmul %6, %7, %cst {dimension_numbers = #tpu.dot_dimension_numbers<[1], [1], [0], [0], [0, 0, 1, 0], [], []>} : vector<8x8xf32>, vector<8x8xf32>, vector<8x8xf32> -> vector<8x8xf32>
    %cst_8 = arith.constant dense<0xFF800000> : vector<8xf32>
    %10 = vector.multi_reduction <maximumf>, %9, %cst_8 [1] : vector<8x8xf32> to vector<8xf32>
    %11 = vector.shape_cast %10 : vector<8xf32> to vector<8x1xf32>
    %12 = vector.broadcast %11 : vector<8x1xf32> to vector<8x8xf32>
    %13 = arith.subf %9, %12 : vector<8x8xf32>
    %14 = math.exp %13 : vector<8x8xf32>
    %cst_9 = arith.constant dense<0.000000e+00> : vector<8xf32>
    %15 = vector.multi_reduction <add>, %14, %cst_9 [1] : vector<8x8xf32> to vector<8xf32>
    %16 = vector.shape_cast %15 : vector<8xf32> to vector<8x1xf32>
    %17 = tpu.reciprocal %16 : vector<8x1xf32> -> vector<8x1xf32>
    %18 = vector.broadcast %17 : vector<8x1xf32> to vector<8x8xf32>
    %19 = arith.mulf %14, %18 : vector<8x8xf32>
    %cst_10 = arith.constant dense<0.000000e+00> : vector<8x8xf32>
    %20 = tpu.matmul %19, %8, %cst_10 {dimension_numbers = #tpu.dot_dimension_numbers<[1], [0], [0], [1], [0, 0, 1, 1], [], []>} : vector<8x8xf32>, vector<8x8xf32>, vector<8x8xf32> -> vector<8x8xf32>
    %c0_11 = arith.constant 0 : index
    %c0_12 = arith.constant 0 : index
    %c0_13 = arith.constant 0 : index
    %21 = vector.load %arg4[%c0_11, %c0_12, %c0_13] : memref<1x8x32xf32, #tpu.memory_space<vmem>>, vector<1x8x8xf32>
    %22 = vector.shape_cast %21 : vector<1x8x8xf32> to vector<8x8xf32>
    %23 = vector.shape_cast %20 : vector<8x8xf32> to vector<1x8x8xf32>
    tpu.vector_store %arg4[%c0_11, %c0_12, %c0_13], %23 {strides = array<i32>} : memref<1x8x32xf32, #tpu.memory_space<vmem>>, vector<1x8x8xf32>,
    %24 = vector.extract_strided_slice %1 {offsets = [0, 8], sizes = [8, 8], strides = [1, 1]} : vector<8x32xf32> to vector<8x8xf32>
    %25 = vector.extract_strided_slice %3 {offsets = [0, 8], sizes = [8, 8], strides = [1, 1]} : vector<8x32xf32> to vector<8x8xf32>
    %26 = vector.extract_strided_slice %5 {offsets = [0, 8], sizes = [8, 8], strides = [1, 1]} : vector<8x32xf32> to vector<8x8xf32>
    %cst_14 = arith.constant dense<0.000000e+00> : vector<8x8xf32>
    %27 = tpu.matmul %24, %25, %cst_14 {dimension_numbers = #tpu.dot_dimension_numbers<[1], [1], [0], [0], [0, 0, 1, 0], [], []>} : vector<8x8xf32>, vector<8x8xf32>, vector<8x8xf32> -> vector<8x8xf32>
    %cst_15 = arith.constant dense<0xFF800000> : vector<8xf32>
    %28 = vector.multi_reduction <maximumf>, %27, %cst_15 [1] : vector<8x8xf32> to vector<8xf32>
    %29 = vector.shape_cast %28 : vector<8xf32> to vector<8x1xf32>
    %30 = vector.broadcast %29 : vector<8x1xf32> to vector<8x8xf32>
    %31 = arith.subf %27, %30 : vector<8x8xf32>
    %32 = math.exp %31 : vector<8x8xf32>
    %cst_16 = arith.constant dense<0.000000e+00> : vector<8xf32>
    %33 = vector.multi_reduction <add>, %32, %cst_16 [1] : vector<8x8xf32> to vector<8xf32>
    %34 = vector.shape_cast %33 : vector<8xf32> to vector<8x1xf32>
    %35 = tpu.reciprocal %34 : vector<8x1xf32> -> vector<8x1xf32>
    %36 = vector.broadcast %35 : vector<8x1xf32> to vector<8x8xf32>
    %37 = arith.mulf %32, %36 : vector<8x8xf32>
    %cst_17 = arith.constant dense<0.000000e+00> : vector<8x8xf32>
    %38 = tpu.matmul %37, %26, %cst_17 {dimension_numbers = #tpu.dot_dimension_numbers<[1], [0], [0], [1], [0, 0, 1, 1], [], []>} : vector<8x8xf32>, vector<8x8xf32>, vector<8x8xf32> -> vector<8x8xf32>
    %c0_18 = arith.constant 0 : index
    %c0_19 = arith.constant 0 : index
    %c8 = arith.constant 8 : index
    %39 = vector.load %arg4[%c0_18, %c0_19, %c8] : memref<1x8x32xf32, #tpu.memory_space<vmem>>, vector<1x8x8xf32>
    %40 = vector.shape_cast %39 : vector<1x8x8xf32> to vector<8x8xf32>
    %41 = vector.shape_cast %38 : vector<8x8xf32> to vector<1x8x8xf32>
    tpu.vector_store %arg4[%c0_18, %c0_19, %c8], %41 {strides = array<i32>} : memref<1x8x32xf32, #tpu.memory_space<vmem>>, vector<1x8x8xf32>,
    %42 = vector.extract_strided_slice %1 {offsets = [0, 16], sizes = [8, 8], strides = [1, 1]} : vector<8x32xf32> to vector<8x8xf32>
    %43 = vector.extract_strided_slice %3 {offsets = [0, 16], sizes = [8, 8], strides = [1, 1]} : vector<8x32xf32> to vector<8x8xf32>
    %44 = vector.extract_strided_slice %5 {offsets = [0, 16], sizes = [8, 8], strides = [1, 1]} : vector<8x32xf32> to vector<8x8xf32>
    %cst_20 = arith.constant dense<0.000000e+00> : vector<8x8xf32>
    %45 = tpu.matmul %42, %43, %cst_20 {dimension_numbers = #tpu.dot_dimension_numbers<[1], [1], [0], [0], [0, 0, 1, 0], [], []>} : vector<8x8xf32>, vector<8x8xf32>, vector<8x8xf32> -> vector<8x8xf32>
    %cst_21 = arith.constant dense<0xFF800000> : vector<8xf32>
    %46 = vector.multi_reduction <maximumf>, %45, %cst_21 [1] : vector<8x8xf32> to vector<8xf32>
    %47 = vector.shape_cast %46 : vector<8xf32> to vector<8x1xf32>
    %48 = vector.broadcast %47 : vector<8x1xf32> to vector<8x8xf32>
    %49 = arith.subf %45, %48 : vector<8x8xf32>
    %50 = math.exp %49 : vector<8x8xf32>
    %cst_22 = arith.constant dense<0.000000e+00> : vector<8xf32>
    %51 = vector.multi_reduction <add>, %50, %cst_22 [1] : vector<8x8xf32> to vector<8xf32>
    %52 = vector.shape_cast %51 : vector<8xf32> to vector<8x1xf32>
    %53 = tpu.reciprocal %52 : vector<8x1xf32> -> vector<8x1xf32>
    %54 = vector.broadcast %53 : vector<8x1xf32> to vector<8x8xf32>
    %55 = arith.mulf %50, %54 : vector<8x8xf32>
    %cst_23 = arith.constant dense<0.000000e+00> : vector<8x8xf32>
    %56 = tpu.matmul %55, %44, %cst_23 {dimension_numbers = #tpu.dot_dimension_numbers<[1], [0], [0], [1], [0, 0, 1, 1], [], []>} : vector<8x8xf32>, vector<8x8xf32>, vector<8x8xf32> -> vector<8x8xf32>
    %c0_24 = arith.constant 0 : index
    %c0_25 = arith.constant 0 : index
    %c16 = arith.constant 16 : index
    %57 = vector.load %arg4[%c0_24, %c0_25, %c16] : memref<1x8x32xf32, #tpu.memory_space<vmem>>, vector<1x8x8xf32>
    %58 = vector.shape_cast %57 : vector<1x8x8xf32> to vector<8x8xf32>
    %59 = vector.shape_cast %56 : vector<8x8xf32> to vector<1x8x8xf32>
    tpu.vector_store %arg4[%c0_24, %c0_25, %c16], %59 {strides = array<i32>} : memref<1x8x32xf32, #tpu.memory_space<vmem>>, vector<1x8x8xf32>,
    %60 = vector.extract_strided_slice %1 {offsets = [0, 24], sizes = [8, 8], strides = [1, 1]} : vector<8x32xf32> to vector<8x8xf32>
    %61 = vector.extract_strided_slice %3 {offsets = [0, 24], sizes = [8, 8], strides = [1, 1]} : vector<8x32xf32> to vector<8x8xf32>
    %62 = vector.extract_strided_slice %5 {offsets = [0, 24], sizes = [8, 8], strides = [1, 1]} : vector<8x32xf32> to vector<8x8xf32>
    %cst_26 = arith.constant dense<0.000000e+00> : vector<8x8xf32>
    %63 = tpu.matmul %60, %61, %cst_26 {dimension_numbers = #tpu.dot_dimension_numbers<[1], [1], [0], [0], [0, 0, 1, 0], [], []>} : vector<8x8xf32>, vector<8x8xf32>, vector<8x8xf32> -> vector<8x8xf32>
    %cst_27 = arith.constant dense<0xFF800000> : vector<8xf32>
    %64 = vector.multi_reduction <maximumf>, %63, %cst_27 [1] : vector<8x8xf32> to vector<8xf32>
    %65 = vector.shape_cast %64 : vector<8xf32> to vector<8x1xf32>
    %66 = vector.broadcast %65 : vector<8x1xf32> to vector<8x8xf32>
    %67 = arith.subf %63, %66 : vector<8x8xf32>
    %68 = math.exp %67 : vector<8x8xf32>
    %cst_28 = arith.constant dense<0.000000e+00> : vector<8xf32>
    %69 = vector.multi_reduction <add>, %68, %cst_28 [1] : vector<8x8xf32> to vector<8xf32>
    %70 = vector.shape_cast %69 : vector<8xf32> to vector<8x1xf32>
    %71 = tpu.reciprocal %70 : vector<8x1xf32> -> vector<8x1xf32>
    %72 = vector.broadcast %71 : vector<8x1xf32> to vector<8x8xf32>
    %73 = arith.mulf %68, %72 : vector<8x8xf32>
    %cst_29 = arith.constant dense<0.000000e+00> : vector<8x8xf32>
    %74 = tpu.matmul %73, %62, %cst_29 {dimension_numbers = #tpu.dot_dimension_numbers<[1], [0], [0], [1], [0, 0, 1, 1], [], []>} : vector<8x8xf32>, vector<8x8xf32>, vector<8x8xf32> -> vector<8x8xf32>
    %c0_30 = arith.constant 0 : index
    %c0_31 = arith.constant 0 : index
    %c24 = arith.constant 24 : index
    %75 = vector.load %arg4[%c0_30, %c0_31, %c24] : memref<1x8x32xf32, #tpu.memory_space<vmem>>, vector<1x8x8xf32>
    %76 = vector.shape_cast %75 : vector<1x8x8xf32> to vector<8x8xf32>
    %77 = vector.shape_cast %74 : vector<8x8xf32> to vector<1x8x8xf32>
    tpu.vector_store %arg4[%c0_30, %c0_31, %c24], %77 {strides = array<i32>} : memref<1x8x32xf32, #tpu.memory_space<vmem>>, vector<1x8x8xf32>,
    return
  }
  func.func @transform_0(%arg0: i32) -> (i32, i32, i32) {
    %c0_i32 = arith.constant 0 : i32
    %c0_i32_0 = arith.constant 0 : i32
    %c0_i32_1 = arith.constant 0 : i32
    return %arg0, %c0_i32, %c0_i32_0 : i32, i32, i32
  }
  func.func @transform_1(%arg0: i32) -> (i32, i32, i32) {
    %c0_i32 = arith.constant 0 : i32
    %c0_i32_0 = arith.constant 0 : i32
    %c0_i32_1 = arith.constant 0 : i32
    return %arg0, %c0_i32, %c0_i32_0 : i32, i32, i32
  }
  func.func @transform_2(%arg0: i32) -> (i32, i32, i32) {
    %c0_i32 = arith.constant 0 : i32
    %c0_i32_0 = arith.constant 0 : i32
    %c0_i32_1 = arith.constant 0 : i32
    return %arg0, %c0_i32, %c0_i32_0 : i32, i32, i32
  }
  func.func @transform_3(%arg0: i32) -> (i32, i32, i32) {
    %c0_i32 = arith.constant 0 : i32
    %c0_i32_0 = arith.constant 0 : i32
    %c0_i32_1 = arith.constant 0 : i32
    return %arg0, %c0_i32, %c0_i32_0 : i32, i32, i32
  }
}

module attributes {stable_mosaic.version = 11 : i64} {
  func.func @add_ln_kernel(%arg0: i32, %arg1: memref<16x32xf32, #tpu.memory_space<vmem>>, %arg2: memref<16x32xf32, #tpu.memory_space<vmem>>, %arg3: memref<1x32xf32, #tpu.memory_space<vmem>>, %arg4: memref<1x32xf32, #tpu.memory_space<vmem>>, %arg5: memref<16x32xf32, #tpu.memory_space<vmem>>, %arg6: memref<16x32xf32, #tpu.memory_space<vmem>>) attributes {dimension_semantics = [#tpu.dimension_semantics<parallel>], iteration_bounds = array<i64: 1>, scalar_prefetch = 0 : i64, scratch_operands = 0 : i64, tpu.core_type = #tpu.core_type<tc>, window_params = [{transform_indices = @transform_0, window_bounds = array<i64: 16, 32>}, {transform_indices = @transform_1, window_bounds = array<i64: 16, 32>}, {pipeline_mode = #tpu.pipeline_mode<synchronous>, transform_indices = @transform_2, window_bounds = array<i64: 1, 32>}, {pipeline_mode = #tpu.pipeline_mode<synchronous>, transform_indices = @transform_3, window_bounds = array<i64: 1, 32>}, {transform_indices = @transform_4, window_bounds = array<i64: 16, 32>}, {transform_indices = @transform_5, window_bounds = array<i64: 16, 32>}]} {
    %c0 = arith.constant 0 : index
    %c0_0 = arith.constant 0 : index
    %0 = vector.load %arg1[%c0, %c0_0] : memref<16x32xf32, #tpu.memory_space<vmem>>, vector<16x32xf32>
    %c0_1 = arith.constant 0 : index
    %c0_2 = arith.constant 0 : index
    %1 = vector.load %arg2[%c0_1, %c0_2] : memref<16x32xf32, #tpu.memory_space<vmem>>, vector<16x32xf32>
    %2 = arith.addf %0, %1 : vector<16x32xf32>
    %c0_3 = arith.constant 0 : index
    %c0_4 = arith.constant 0 : index
    %3 = vector.load %arg5[%c0_3, %c0_4] : memref<16x32xf32, #tpu.memory_space<vmem>>, vector<16x32xf32>
    tpu.vector_store %arg5[%c0_3, %c0_4], %2 {strides = array<i32>} : memref<16x32xf32, #tpu.memory_space<vmem>>, vector<16x32xf32>,
    %c0_5 = arith.constant 0 : index
    %c0_6 = arith.constant 0 : index
    %4 = vector.load %arg3[%c0_5, %c0_6] : memref<1x32xf32, #tpu.memory_space<vmem>>, vector<1x32xf32>
    %c0_7 = arith.constant 0 : index
    %c0_8 = arith.constant 0 : index
    %5 = vector.load %arg4[%c0_7, %c0_8] : memref<1x32xf32, #tpu.memory_space<vmem>>, vector<1x32xf32>
    %cst = arith.constant dense<0.000000e+00> : vector<16xf32>
    %6 = vector.multi_reduction <add>, %2, %cst [1] : vector<16x32xf32> to vector<16xf32>
    %7 = vector.shape_cast %6 : vector<16xf32> to vector<16x1xf32>
    %cst_9 = arith.constant 3.200000e+01 : f32
    %8 = vector.broadcast %cst_9 : f32 to vector<16x1xf32>
    %9 = arith.divf %7, %8 : vector<16x1xf32>
    %10 = vector.broadcast %9 : vector<16x1xf32> to vector<16x32xf32>
    %11 = arith.subf %2, %10 : vector<16x32xf32>
    %12 = arith.mulf %11, %11 : vector<16x32xf32>
    %cst_10 = arith.constant dense<0.000000e+00> : vector<16xf32>
    %13 = vector.multi_reduction <add>, %12, %cst_10 [1] : vector<16x32xf32> to vector<16xf32>
    %14 = vector.shape_cast %13 : vector<16xf32> to vector<16x1xf32>
    %cst_11 = arith.constant 3.200000e+01 : f32
    %15 = vector.broadcast %cst_11 : f32 to vector<16x1xf32>
    %16 = arith.divf %14, %15 : vector<16x1xf32>
    %cst_12 = arith.constant 9.99999974E-6 : f32
    %17 = vector.broadcast %cst_12 : f32 to vector<16x1xf32>
    %18 = arith.addf %16, %17 : vector<16x1xf32>
    %19 = math.rsqrt %18 : vector<16x1xf32>
    %20 = vector.broadcast %19 : vector<16x1xf32> to vector<16x32xf32>
    %21 = arith.mulf %11, %20 : vector<16x32xf32>
    %22 = vector.broadcast %4 : vector<1x32xf32> to vector<16x32xf32>
    %23 = arith.mulf %21, %22 : vector<16x32xf32>
    %24 = vector.broadcast %5 : vector<1x32xf32> to vector<16x32xf32>
    %25 = arith.addf %23, %24 : vector<16x32xf32>
    %c0_13 = arith.constant 0 : index
    %c0_14 = arith.constant 0 : index
    %26 = vector.load %arg6[%c0_13, %c0_14] : memref<16x32xf32, #tpu.memory_space<vmem>>, vector<16x32xf32>
    tpu.vector_store %arg6[%c0_13, %c0_14], %25 {strides = array<i32>} : memref<16x32xf32, #tpu.memory_space<vmem>>, vector<16x32xf32>,
    return
  }
  func.func @transform_0(%arg0: i32) -> (i32, i32) {
    %c0_i32 = arith.constant 0 : i32
    %c0_i32_0 = arith.constant 0 : i32
    return %arg0, %c0_i32 : i32, i32
  }
  func.func @transform_1(%arg0: i32) -> (i32, i32) {
    %c0_i32 = arith.constant 0 : i32
    %c0_i32_0 = arith.constant 0 : i32
    return %arg0, %c0_i32 : i32, i32
  }
  func.func @transform_2(%arg0: i32) -> (i32, i32) {
    %c0_i32 = arith.constant 0 : i32
    %c0_i32_0 = arith.constant 0 : i32
    %c0_i32_1 = arith.constant 0 : i32
    return %c0_i32, %c0_i32_0 : i32, i32
  }
  func.func @transform_3(%arg0: i32) -> (i32, i32) {
    %c0_i32 = arith.constant 0 : i32
    %c0_i32_0 = arith.constant 0 : i32
    %c0_i32_1 = arith.constant 0 : i32
    return %c0_i32, %c0_i32_0 : i32, i32
  }
  func.func @transform_4(%arg0: i32) -> (i32, i32) {
    %c0_i32 = arith.constant 0 : i32
    %c0_i32_0 = arith.constant 0 : i32
    return %arg0, %c0_i32 : i32, i32
  }
  func.func @transform_5(%arg0: i32) -> (i32, i32) {
    %c0_i32 = arith.constant 0 : i32
    %c0_i32_0 = arith.constant 0 : i32
    return %arg0, %c0_i32 : i32, i32
  }
}

module attributes {stable_mosaic.version = 11 : i64} {
  func.func @ffn_kernel(%arg0: i32, %arg1: memref<16x32xf32, #tpu.memory_space<vmem>>, %arg2: memref<16x32xf32, #tpu.memory_space<vmem>>, %arg3: memref<32x32xf32, #tpu.memory_space<vmem>>, %arg4: memref<1x32xf32, #tpu.memory_space<vmem>>, %arg5: memref<32x32xf32, #tpu.memory_space<vmem>>, %arg6: memref<1x32xf32, #tpu.memory_space<vmem>>, %arg7: memref<16x32xf32, #tpu.memory_space<vmem>>) attributes {dimension_semantics = [#tpu.dimension_semantics<parallel>], iteration_bounds = array<i64: 1>, scalar_prefetch = 0 : i64, scratch_operands = 0 : i64, tpu.core_type = #tpu.core_type<tc>, window_params = [{transform_indices = @transform_0, window_bounds = array<i64: 16, 32>}, {transform_indices = @transform_1, window_bounds = array<i64: 16, 32>}, {pipeline_mode = #tpu.pipeline_mode<synchronous>, transform_indices = @transform_2, window_bounds = array<i64: 32, 32>}, {pipeline_mode = #tpu.pipeline_mode<synchronous>, transform_indices = @transform_3, window_bounds = array<i64: 1, 32>}, {pipeline_mode = #tpu.pipeline_mode<synchronous>, transform_indices = @transform_4, window_bounds = array<i64: 32, 32>}, {pipeline_mode = #tpu.pipeline_mode<synchronous>, transform_indices = @transform_5, window_bounds = array<i64: 1, 32>}, {transform_indices = @transform_6, window_bounds = array<i64: 16, 32>}]} {
    %c0 = arith.constant 0 : index
    %c0_0 = arith.constant 0 : index
    %0 = vector.load %arg1[%c0, %c0_0] : memref<16x32xf32, #tpu.memory_space<vmem>>, vector<16x32xf32>
    %c0_1 = arith.constant 0 : index
    %c0_2 = arith.constant 0 : index
    %1 = vector.load %arg3[%c0_1, %c0_2] : memref<32x32xf32, #tpu.memory_space<vmem>>, vector<32x32xf32>
    %cst = arith.constant dense<0.000000e+00> : vector<16x32xf32>
    %2 = tpu.matmul %0, %1, %cst {dimension_numbers = #tpu.dot_dimension_numbers<[1], [0], [0], [1], [0, 0, 1, 1], [], []>} : vector<16x32xf32>, vector<32x32xf32>, vector<16x32xf32> -> vector<16x32xf32>
    %c0_3 = arith.constant 0 : index
    %c0_4 = arith.constant 0 : index
    %3 = vector.load %arg4[%c0_3, %c0_4] : memref<1x32xf32, #tpu.memory_space<vmem>>, vector<1x32xf32>
    %4 = vector.broadcast %3 : vector<1x32xf32> to vector<16x32xf32>
    %5 = arith.addf %2, %4 : vector<16x32xf32>
    %cst_5 = arith.constant 5.000000e-01 : f32
    %6 = vector.broadcast %cst_5 : f32 to vector<16x32xf32>
    %7 = arith.mulf %6, %5 : vector<16x32xf32>
    %cst_6 = arith.constant 4.471500e-02 : f32
    %8 = vector.broadcast %cst_6 : f32 to vector<16x32xf32>
    %9 = arith.mulf %8, %5 : vector<16x32xf32>
    %10 = arith.mulf %9, %5 : vector<16x32xf32>
    %11 = arith.mulf %10, %5 : vector<16x32xf32>
    %12 = arith.addf %5, %11 : vector<16x32xf32>
    %cst_7 = arith.constant 0.797884583 : f32
    %13 = vector.broadcast %cst_7 : f32 to vector<16x32xf32>
    %14 = arith.mulf %13, %12 : vector<16x32xf32>
    %15 = math.tanh %14 : vector<16x32xf32>
    %cst_8 = arith.constant 1.000000e+00 : f32
    %16 = vector.broadcast %cst_8 : f32 to vector<16x32xf32>
    %17 = arith.addf %16, %15 : vector<16x32xf32>
    %18 = arith.mulf %7, %17 : vector<16x32xf32>
    %c0_9 = arith.constant 0 : index
    %c0_10 = arith.constant 0 : index
    %19 = vector.load %arg5[%c0_9, %c0_10] : memref<32x32xf32, #tpu.memory_space<vmem>>, vector<32x32xf32>
    %cst_11 = arith.constant dense<0.000000e+00> : vector<16x32xf32>
    %20 = tpu.matmul %18, %19, %cst_11 {dimension_numbers = #tpu.dot_dimension_numbers<[1], [0], [0], [1], [0, 0, 1, 1], [], []>} : vector<16x32xf32>, vector<32x32xf32>, vector<16x32xf32> -> vector<16x32xf32>
    %c0_12 = arith.constant 0 : index
    %c0_13 = arith.constant 0 : index
    %21 = vector.load %arg6[%c0_12, %c0_13] : memref<1x32xf32, #tpu.memory_space<vmem>>, vector<1x32xf32>
    %22 = vector.broadcast %21 : vector<1x32xf32> to vector<16x32xf32>
    %23 = arith.addf %20, %22 : vector<16x32xf32>
    %c0_14 = arith.constant 0 : index
    %c0_15 = arith.constant 0 : index
    %24 = vector.load %arg2[%c0_14, %c0_15] : memref<16x32xf32, #tpu.memory_space<vmem>>, vector<16x32xf32>
    %25 = arith.addf %23, %24 : vector<16x32xf32>
    %c0_16 = arith.constant 0 : index
    %c0_17 = arith.constant 0 : index
    %26 = vector.load %arg7[%c0_16, %c0_17] : memref<16x32xf32, #tpu.memory_space<vmem>>, vector<16x32xf32>
    tpu.vector_store %arg7[%c0_16, %c0_17], %25 {strides = array<i32>} : memref<16x32xf32, #tpu.memory_space<vmem>>, vector<16x32xf32>,
    return
  }
  func.func @transform_0(%arg0: i32) -> (i32, i32) {
    %c0_i32 = arith.constant 0 : i32
    %c0_i32_0 = arith.constant 0 : i32
    return %arg0, %c0_i32 : i32, i32
  }
  func.func @transform_1(%arg0: i32) -> (i32, i32) {
    %c0_i32 = arith.constant 0 : i32
    %c0_i32_0 = arith.constant 0 : i32
    return %arg0, %c0_i32 : i32, i32
  }
  func.func @transform_2(%arg0: i32) -> (i32, i32) {
    %c0_i32 = arith.constant 0 : i32
    %c0_i32_0 = arith.constant 0 : i32
    %c0_i32_1 = arith.constant 0 : i32
    return %c0_i32, %c0_i32_0 : i32, i32
  }
  func.func @transform_3(%arg0: i32) -> (i32, i32) {
    %c0_i32 = arith.constant 0 : i32
    %c0_i32_0 = arith.constant 0 : i32
    %c0_i32_1 = arith.constant 0 : i32
    return %c0_i32, %c0_i32_0 : i32, i32
  }
  func.func @transform_4(%arg0: i32) -> (i32, i32) {
    %c0_i32 = arith.constant 0 : i32
    %c0_i32_0 = arith.constant 0 : i32
    %c0_i32_1 = arith.constant 0 : i32
    return %c0_i32, %c0_i32_0 : i32, i32
  }
  func.func @transform_5(%arg0: i32) -> (i32, i32) {
    %c0_i32 = arith.constant 0 : i32
    %c0_i32_0 = arith.constant 0 : i32
    %c0_i32_1 = arith.constant 0 : i32
    return %c0_i32, %c0_i32_0 : i32, i32
  }
  func.func @transform_6(%arg0: i32) -> (i32, i32) {
    %c0_i32 = arith.constant 0 : i32
    %c0_i32_0 = arith.constant 0 : i32
    return %arg0, %c0_i32 : i32, i32
  }
}

</mosaic_0001>

<bundles_post_ra>
// kernel: transformer_block_forward.4
= control target key start
LH: loop header
LB: loop body
LE: loop exit
PB: predicated region body
PF: predicated region fallthrough
CT: control target
= control target key end

     0   :  { %vm27_vm0 = vcmask 261120   ;;  %v176_v4 = vmov 32.0   ;;  %s177_s17 = smov 64   ;;  %s178_s18 = smov 96   ;;  %s276_s0 = inlined_call_operand.vmem [shape: f32[16,32], index: 0, kind: input, shape index: {}]   ;;  %s277_s1 = inlined_call_operand.vmem [shape: f32[1,32], index: 1, kind: input, shape index: {}]   ;;  %s278_s2 = inlined_call_operand.vmem [shape: f32[1,32], index: 2, kind: input, shape index: {}]   ;;  %s279_s4 = inlined_call_operand.vmem [shape: f32[1,96], index: 4, kind: input, shape index: {}]   ;;  %s280_s3 = inlined_call_operand.vmem [shape: f32[32,96], index: 3, kind: input, shape index: {}]   ;;  %s281_s5 = inlined_call_operand.vmem [shape: f32[16,32], index: 5, kind: output, shape index: {0}]   ;;  %s282_s6 = inlined_call_operand.vmem [shape: f32[16,32], index: 6, kind: output, shape index: {1}]   ;;  %s283_s7 = inlined_call_operand.vmem [shape: f32[16,32], index: 7, kind: output, shape index: {2}]  }
   0x1   :  { %v23_v0 = vld [vmem:[%s276_s0] sm:$0xff]  ;;  %v24_v2 = vld [vmem:[%s276_s0 + $0x8] sm:$0xff]  ;;  %170 = vrcp.f32 %v176_v4  ;;  %v92_v21 = vld [vmem:[%s280_s3 + $0x18] sm:$0xff] }
   0x2   :  { %v28_v1 = vsel %vm27_vm0, %v23_v0, 0.0  ;;  %v31_v3 = vsel %vm27_vm0, %v24_v2, 0.0  ;;  %115 = vmatpush.msra.mxu0 %v92_v21  ;;  %160 = vmatpush.msra.mxu1 %v92_v21  ;;  %v91_v22 = vld [vmem:[%s280_s3 + $0x10] sm:$0xff]  ;;  %v90_v23 = vld [vmem:[%s280_s3 + $0x8] sm:$0xff]  ;;  %v89_v24 = vld [vmem:[%s280_s3] sm:$0xff] }
   0x3   :  { %29 = vadd.xlane.f32.xlu0 %v28_v1  ;;  %v167_v39 = vld [vmem:[%s277_s1] ss:$0 sm:$0xff] }
   0x4   :  { %116 = vmatpush.msra.mxu0 %v91_v22  ;;  %161 = vmatpush.msra.mxu1 %v91_v22  ;;  %v168_v43 = vld [vmem:[%s278_s2] ss:$0 sm:$0xff] }
   0x5   :  { %v169_v53 = vld [vmem:[%s279_s4] ss:$0 sm:$0xff] }
   0x6   :  { %117 = vmatpush.msra.mxu0 %v90_v23  ;;  %162 = vmatpush.msra.mxu1 %v90_v23 }
   0x7   :  { %v171_v5 = vpop.eup %170 }
   0x8   :  { %v35_v6 = vmul.f32 32.0, %v171_v5  ;;  %vm39_vm1 = vweird.f32 %v171_v5  ;;  %118 = vmatpush.msra.mxu0 %v89_v24  ;;  %163 = vmatpush.msra.mxu1 %v89_v24 }
   0xa   :  { %v36_v7 = vsub.f32 1.0, %v35_v6 }
   0xb   :  { %32 = vadd.xlane.f32.xlu0 %v31_v3 }
   0xc   :  { %v37_v8 = vmul.f32 %v171_v5, %v36_v7 }
   0xe   :  { %v38_v9 = vadd.f32 %v171_v5, %v37_v8 }
  0x10   :  { %v40_v10 = vsel %vm39_vm1, %v171_v5, %v38_v9 }
  0x76   :  { %v30_v11 = vpop.xlane.xlu0 %29 }
  0x77   :  { %v41_v12 = vmul.f32 %v40_v10, %v30_v11 }
  0x79   :  { %v43_v13 = vsub.f32 %v23_v0, %v41_v12 }
  0x7b   :  { %v45_v14 = vmul.f32 %v43_v13, %v43_v13 }
  0x7d   :  { %v47_v15 = vsel %vm27_vm0, %v45_v14, 0.0 }
  0x7e   :  { %48 = vadd.xlane.f32.xlu1 %v47_v15  ;;  %v33_v16 = vpop.xlane.xlu0 %32 }
  0x7f   :  { %v42_v17 = vmul.f32 %v40_v10, %v33_v16 }
  0x81   :  { %v44_v18 = vsub.f32 %v24_v2, %v42_v17 }
  0x83   :  { %v46_v19 = vmul.f32 %v44_v18, %v44_v18 }
  0x85   :  { %v50_v20 = vsel %vm27_vm0, %v46_v19, 0.0 }
  0x86   :  { %51 = vadd.xlane.f32.xlu1 %v50_v20 }
  0xf1   :  { %v49_v25 = vpop.xlane.xlu1 %48 }
  0xf2   :  { %v53_v26 = vmul.f32 %v49_v25, %v40_v10 }
  0xf4   :  { %v55_v27 = vadd.f32 1e-05, %v53_v26 }
  0xf6   :  { %172 = vrsqrt.f32 %v55_v27  ;;  %vm63_vm3 = vweird.f32 %v55_v27 }
  0xf9   :  { %v52_v28 = vpop.xlane.xlu1 %51 }
  0xfa   :  { %v54_v29 = vmul.f32 %v52_v28, %v40_v10 }
  0xfc   :  { %v173_v30 = vpop.eup %172  ;;  %v56_v31 = vadd.f32 1e-05, %v54_v29 }
  0xfd   :  { %v58_v32 = vmul.f32 %v173_v30, %v55_v27  ;;  %vm64_vm2 = vweird.f32 %v173_v30 }
  0xfe   :  { %174 = vrsqrt.f32 %v56_v31  ;;  %vm65_vm4 = vmor %vm63_vm3, %vm64_vm2  ;;  %vm73_vm6 = vweird.f32 %v56_v31 }
  0xff   :  { %v59_v33 = vmul.f32 %v173_v30, %v58_v32 }
 0x101   :  { %v60_v34 = vmul.f32 0.5, %v59_v33 }
 0x103   :  { %v61_v35 = vsub.f32 1.5, %v60_v34 }
 0x104   :  { %v175_v36 = vpop.eup %174 }
 0x105   :  { %v62_v37 = vmul.f32 %v173_v30, %v61_v35  ;;  %v68_v38 = vmul.f32 %v175_v36, %v56_v31  ;;  %vm74_vm5 = vweird.f32 %v175_v36 }
 0x106   :  { %vm75_vm7 = vmor %vm73_vm6, %vm74_vm5 }
 0x107   :  { %v66_v40 = vsel %vm65_vm4, %v173_v30, %v62_v37  ;;  %v69_v41 = vmul.f32 %v175_v36, %v68_v38 }
 0x108   :  { %v77_v42 = vmul.f32 %v66_v40, %v43_v13 }
 0x109   :  { %v70_v44 = vmul.f32 0.5, %v69_v41 }
 0x10a   :  { %v82_v45 = vmul.f32 %v167_v39, %v77_v42 }
 0x10b   :  { %v71_v46 = vsub.f32 1.5, %v70_v44 }
 0x10c   :  { %v87_v47 = vadd.f32 %v168_v43, %v82_v45 }
 0x10d   :  { %v72_v48 = vmul.f32 %v175_v36, %v71_v46 }
 0x10e   :  { %158 = vmatmul.msk.f32.vlgmr.msra.gmra.mxu0 %vm27_vm0, %v87_v47 }
 0x10f   :  { %v76_v49 = vsel %vm75_vm7, %v175_v36, %v72_v48 }
 0x110   :  { %v78_v50 = vmul.f32 %v76_v49, %v44_v18 }
 0x112   :  { %v83_v51 = vmul.f32 %v167_v39, %v78_v50 }
 0x114   :  { %v88_v52 = vadd.f32 %v168_v43, %v83_v51 }
 0x116   :  { %159 = vmatmul.msk.f32.vlgmr.msra.gmra.mxu1 %vm27_vm0, %v88_v52 }
 0x18b   :  { %v120_v54 = vpop.f32.mrf.mxu0 }
 0x18c   :  { %v121_v55 = vadd.f32 %v169_v53, %v120_v54 }
 0x18e   :  { %126 = vst.msk [vmem:[%s281_s5] sm:$0xff] %vm27_vm0, %v121_v55  ;;  %138 = vrot.lane.b32.xlu0 %v121_v55, %s177_s17  ;;  %130 = vrot.lane.b32.xlu2 %v121_v55, %s178_s18 }
 0x193   :  { %v123_v56 = vpop.f32.mrf.mxu1 }
 0x194   :  { %v124_v57 = vadd.f32 %v169_v53, %v123_v56 }
 0x196   :  { %127 = vst.msk [vmem:[%s281_s5 + $0x8] sm:$0xff] %vm27_vm0, %v124_v57  ;;  %140 = vrot.lane.b32.xlu1 %v124_v57, %s177_s17  ;;  %132 = vrot.lane.b32.xlu2 %v124_v57, %s178_s18 }
 0x1e8   :  { %v131_v58 = vpop.permute.xlu2 %130 }
 0x1e9   :  { %136 = vst.msk [vmem:[%s282_s6] sm:$0xff] %vm27_vm0, %v131_v58 }
 0x1f0   :  { %v133_v59 = vpop.permute.xlu2 %132 }
 0x1f1   :  { %137 = vst.msk [vmem:[%s282_s6 + $0x8] sm:$0xff] %vm27_vm0, %v133_v59 }
 0x200   :  { %v139_v60 = vpop.permute.xlu0 %138 }
 0x201   :  { %144 = vst.msk [vmem:[%s283_s7] sm:$0xff] %vm27_vm0, %v139_v60 }
 0x208   :  { %v141_v61 = vpop.permute.xlu1 %140 }
 0x209   :  { %145 = vst.msk [vmem:[%s283_s7 + $0x8] sm:$0xff] %vm27_vm0, %v141_v61 }

// kernel: transformer_block_forward.5
= control target key start
LH: loop header
LB: loop body
LE: loop exit
PB: predicated region body
PF: predicated region fallthrough
CT: control target
= control target key end

     0   :  { %s695_s12 = smov 0   ;;  %s770_s0 = inlined_call_operand.vmem [shape: f32[2,8,32], index: 0, kind: input, shape index: {}]   ;;  %s771_s1 = inlined_call_operand.vmem [shape: f32[2,8,32], index: 1, kind: input, shape index: {}]   ;;  %s772_s2 = inlined_call_operand.vmem [shape: f32[2,8,32], index: 2, kind: input, shape index: {}]   ;;  %s773_s3 = inlined_call_operand.vmem [shape: f32[2,8,32], index: 3, kind: output, shape index: {}]  }
   0x1 LB: > { %s608_s13 = sadd.s32 4294967295, %s667_s12   ;;  %p612_p0 = scmp.ge.s32.totalorder %s667_s12, 1  ;;  %s667_s12 = sphi %s695_s12, %s13_s12  }
   0x2   : > { %p154_p1 = scmp.lt.s32.totalorder %s667_s12, 3 }
   0x4   : > { %p155_p2 = pnand %p612_p0, %p154_p1 }
   0x5   : > { %p184_p3 = scmp.lt.s32.totalorder (!%p155_p2), %s608_s13, 1  ;;  %s669_s21 = smov (!%p155_p2), 120  }
   0x6   : > { %158 = sbr.rel (%p155_p2) target bundleno = 1055 (0x41f), region = 32  ;;  %s670_s22 = smov (!%p155_p2), 112  }
   0x7   : > { %s671_s23 = smov (!%p155_p2), 104   ;;  %s672_s30 = smov (!%p155_p2), 24  }
   0x8   : > { %s673_s4 = smov (!%p155_p2), 8   ;;  %s674_s5 = smov (!%p155_p2), 16  }
   0xb   : > { %s775_s13 = smov (!%p184_p3, %s608_s13), 1  ;;  %vm203_vm0 = vcmask 64512  }
   0xc   : > { %s703_s14 = sshll.u32 %s775_s13, 3 }
   0xd   : > { %s191_s17 = scalar_lea.vmem %s771_s1, %s703_s14  ;;  %s187_s20 = scalar_lea.vmem %s770_s0, %s703_s14 }
   0xe   : > { %v201_v0 = vld [vmem:[%s191_s17] sm:$0xff]  ;;  %s195_s26 = scalar_lea.vmem %s772_s2, %s703_s14  ;;  %s749_s29 = scalar_lea.vmem %s773_s3, %s703_s14 }
   0xf   : > { %617 = vmatpush.xpose.msk.msra.mxu0 %vm203_vm0, %v201_v0  ;;  %v200_v1 = vld [vmem:[%s187_s20] sm:$0xff]  ;;  %280 = vrot.lane.b32.xlu1 %v201_v0, %s669_s21 }
  0x10   : > { %365 = vrot.lane.b32.xlu2 %v201_v0, %s670_s22  ;;  %v732_v16 = vld [vmem:[%s195_s26] sm:$0xff] }
  0x11   : > { %272 = vmatpush.msra.mxu1 %v732_v16 }
  0x12   : > { %618 = vmatmul.msk.f32.vlgmr.msra.gmra.mxu0 %vm203_vm0, %v200_v1 }
  0x17   : > { %278 = vrot.lane.b32.xlu1 %v200_v1, %s669_s21 }
  0x18   : > { %449 = vrot.lane.b32.xlu2 %v201_v0, %s671_s23 }
  0x1f   : > { %447 = vrot.lane.b32.xlu1 %v200_v1, %s671_s23 }
  0x6a   : > { %v366_v6 = vpop.permute.xlu2 %365 }
  0x6b   : > { %623 = vmatpush.xpose.msk.msrb.mxu1 %vm203_vm0, %v366_v6 }
  0x72   : > { %v450_v7 = vpop.permute.xlu2 %449 }
  0x73   : > { %626 = vmatpush.xpose.msk.msrb.mxu0 %vm203_vm0, %v450_v7 }
  0x81   : > { %v281_v2 = vpop.permute.xlu1 %280 }
  0x82   : > { %620 = vmatpush.xpose.msk.msra.mxu2 %vm203_vm0, %v281_v2 }
  0x89   : > { %v279_v3 = vpop.permute.xlu1 %278 }
  0x8a   : > { %621 = vmatmul.msk.f32.vlgmr.msra.gmra.mxu2 %vm203_vm0, %v279_v3 }
  0x8f   : > { %v227_v4 = vpop.f32.mrf.mxu0 }
  0x90   : > { %v230_v5 = vsel %vm203_vm0, %v227_v4, -inf }
  0x91   : > { %231 = vmax.xlane.f32.xlu0 %v230_v5  ;;  %v448_v8 = vpop.permute.xlu1 %447 }
  0x92   : > { %627 = vmatmul.msk.f32.vlgmr.msrb.gmra.mxu0 %vm203_vm0, %v448_v8 }
 0x104   : > { %v232_v9 = vpop.xlane.xlu0 %231 }
 0x105   : > { %v233_v10 = vsub.f32 %v227_v4, %v232_v9 }
 0x107   : > { %v234_v11 = vmul.f32 1.442695, %v233_v10 }
 0x109   : > { %645 = vpow2.f32 %v234_v11 }
 0x10d   : > { %v303_v12 = vpop.f32.mrf.mxu2 }
 0x10e   : > { %v306_v13 = vsel %vm203_vm0, %v303_v12, -inf }
 0x10f   : > { %v646_v14 = vpop.eup %645  ;;  %307 = vmax.xlane.f32.xlu2 %v306_v13  ;;  %v472_v17 = vpop.f32.mrf.mxu0 }
 0x110   : > { %v236_v15 = vsel %vm203_vm0, %v646_v14, 0.0  ;;  %v475_v18 = vsel %vm203_vm0, %v472_v17, -inf }
 0x111   : > { %237 = vadd.xlane.f32.xlu0 %v236_v15 }
 0x125   : > { %363 = vrot.lane.b32.xlu0 %v200_v1, %s670_s22 }
 0x14f   : > { %476 = vmax.xlane.f32.xlu0 %v475_v18 }
 0x163   : > { %499 = vrot.lane.b32.xlu0 %v732_v16, %s671_s23 }
 0x182   : > { %v308_v19 = vpop.xlane.xlu2 %307 }
 0x183   : > { %v309_v20 = vsub.f32 %v303_v12, %v308_v19 }
 0x184   : > { %v238_v21 = vpop.xlane.xlu0 %237 }
 0x185   : > { %647 = vrcp.f32 %v238_v21  ;;  %v310_v22 = vmul.f32 1.442695, %v309_v20  ;;  %v250_v28 = vand.u32 2147483648, %v238_v21  ;;  %v248_v30 = vand.u32 2147483647, %v238_v21 }
 0x186   : > { %vm244_vm2 = vweird.f32 %v238_v21 }
 0x187   : > { %649 = vpow2.f32 %v310_v22  ;;  %v251_v32 = vor.u32 1.1754944e-38, %v250_v28  ;;  %vm249_vm4 = vcmp.eq.f32.partialorder %v248_v30, 8.507059e+37 }
 0x18b   : > { %v648_v23 = vpop.eup %647 }
 0x18c   : > { %v240_v24 = vmul.f32 %v648_v23, %v238_v21  ;;  %vm245_vm1 = vweird.f32 %v648_v23 }
 0x18d   : > { %v737_v25 = vpop.eup %649  ;;  %vm246_vm3 = vmor %vm244_vm2, %vm245_vm1  ;;  %vm361_vm2 = vcmask 130112  }
 0x18e   : > { %v241_v26 = vsub.f32 1.0, %v240_v24  ;;  %v312_v27 = vsel %vm203_vm0, %v737_v25, 0.0 }
 0x18f   : > { %313 = vadd.xlane.f32.xlu2 %v312_v27 }
 0x190   : > { %v242_v29 = vmul.f32 %v648_v23, %v241_v26 }
 0x192   : > { %v243_v31 = vadd.f32 %v648_v23, %v242_v29 }
 0x194   : > { %v247_v33 = vsel %vm246_vm3, %v648_v23, %v243_v31  ;;  %vm445_vm3 = vcmask 195712  }
 0x195   : > { %v252_v34 = vsel %vm249_vm4, %v251_v32, %v247_v33  ;;  %vm529_vm4 = vcmask 261312  }
 0x196   : > { %v253_v35 = vmul.f32 %v646_v14, %v252_v34 }
 0x197   : > { %v364_v36 = vpop.permute.xlu0 %363 }
 0x198   : > { %619 = vmatmul.msk.f32.vlgmr.msra.gmra.mxu1 %vm203_vm0, %v253_v35 }
 0x1a0   : > { %624 = vmatmul.msk.f32.vlgmr.msrb.gmra.mxu1 %vm203_vm0, %v364_v36 }
 0x1c2   : > { %v477_v37 = vpop.xlane.xlu0 %476 }
 0x1c3   : > { %v478_v38 = vsub.f32 %v472_v17, %v477_v37 }
 0x1c5   : > { %v479_v40 = vmul.f32 1.442695, %v478_v38 }
 0x1c7   : > { %651 = vpow2.f32 %v479_v40 }
 0x1cd   : > { %v652_v43 = vpop.eup %651 }
 0x1ce   : > { %v481_v44 = vsel %vm203_vm0, %v652_v43, 0.0 }
 0x1d5   : > { %v500_v45 = vpop.permute.xlu0 %499 }
 0x1d6   : > { %520 = vmatpush.msrb.mxu2 %v500_v45 }
 0x202   : > { %v314_v63 = vpop.xlane.xlu2 %313 }
 0x203   : > { %vm320_vm9 = vweird.f32 %v314_v63  ;;  %v326_v4 = vand.u32 2147483648, %v314_v63  ;;  %v324_v6 = vand.u32 2147483647, %v314_v63 }
 0x205   : > { %v327_v8 = vor.u32 1.1754944e-38, %v326_v4  ;;  %vm325_vm12 = vcmp.eq.f32.partialorder %v324_v6, 8.507059e+37 }
 0x215   : > { %v274_v39 = vpop.f32.mrf.mxu1 }
 0x216   : > { %277 = vst.msk [vmem:[%s749_s29] sm:$0xff] %vm203_vm0, %v274_v39 }
 0x21d   : > { %v388_v41 = vpop.f32.mrf.mxu1 }
 0x21e   : > { %v391_v42 = vsel %vm203_vm0, %v388_v41, -inf }
 0x21f   : > { %392 = vmax.xlane.f32.xlu1 %v391_v42 }
 0x227   : > { %482 = vadd.xlane.f32.xlu1 %v481_v44 }
 0x240   : > { %415 = vrot.lane.b32.xlu1 %v732_v16, %s670_s22 }
 0x292   : > { %v393_v46 = vpop.xlane.xlu1 %392 }
 0x293   : > { %v394_v47 = vsub.f32 %v388_v41, %v393_v46 }
 0x295   : > { %v395_v48 = vmul.f32 1.442695, %v394_v47 }
 0x297   : > { %653 = vpow2.f32 %v395_v48 }
 0x29a   : > { %v483_v49 = vpop.xlane.xlu1 %482 }
 0x29b   : > { %655 = vrcp.f32 %v483_v49  ;;  %v495_v55 = vand.u32 2147483648, %v483_v49  ;;  %v493_v57 = vand.u32 2147483647, %v483_v49  ;;  %vm489_vm6 = vweird.f32 %v483_v49 }
 0x29c   : > { %657 = vrcp.f32 %v314_v63 }
 0x29d   : > { %v654_v50 = vpop.eup %653  ;;  %v496_v59 = vor.u32 1.1754944e-38, %v495_v55  ;;  %vm494_vm8 = vcmp.eq.f32.partialorder %v493_v57, 8.507059e+37 }
 0x29e   : > { %v397_v51 = vsel %vm203_vm0, %v654_v50, 0.0 }
 0x29f   : > { %398 = vadd.xlane.f32.xlu2 %v397_v51 }
 0x2a1   : > { %v656_v52 = vpop.eup %655 }
 0x2a2   : > { %v485_v53 = vmul.f32 %v656_v52, %v483_v49  ;;  %vm490_vm5 = vweird.f32 %v656_v52  ;;  %v658_v0 = vpop.eup %657 }
 0x2a3   : > { %vm491_vm7 = vmor %vm489_vm6, %vm490_vm5  ;;  %v316_v1 = vmul.f32 %v658_v0, %v314_v63  ;;  %vm321_vm10 = vweird.f32 %v658_v0 }
 0x2a4   : > { %v486_v54 = vsub.f32 1.0, %v485_v53  ;;  %vm322_vm11 = vmor %vm320_vm9, %vm321_vm10 }
 0x2a5   : > { %v317_v2 = vsub.f32 1.0, %v316_v1 }
 0x2a6   : > { %v487_v56 = vmul.f32 %v656_v52, %v486_v54 }
 0x2a7   : > { %v318_v3 = vmul.f32 %v658_v0, %v317_v2 }
 0x2a8   : > { %v488_v58 = vadd.f32 %v656_v52, %v487_v56 }
 0x2a9   : > { %v319_v5 = vadd.f32 %v658_v0, %v318_v3 }
 0x2aa   : > { %v492_v60 = vsel %vm491_vm7, %v656_v52, %v488_v58 }
 0x2ab   : > { %v497_v61 = vsel %vm494_vm8, %v496_v59, %v492_v60  ;;  %v323_v9 = vsel %vm322_vm11, %v658_v0, %v319_v5 }
 0x2ac   : > { %v498_v62 = vmul.f32 %v652_v43, %v497_v61  ;;  %v328_v10 = vsel %vm325_vm12, %v327_v8, %v323_v9 }
 0x2ad   : > { %v329_v14 = vmul.f32 %v737_v25, %v328_v10 }
 0x2ae   : > { %628 = vmatmul.msk.f32.vlgmr.msrb.gmra.mxu2 %vm203_vm0, %v498_v62 }
 0x2b2   : > { %v416_v15 = vpop.permute.xlu1 %415 }
 0x2b7   : > { %331 = vrot.lane.b32.xlu2 %v732_v16, %s669_s21 }
 0x312   : > { %v399_v7 = vpop.xlane.xlu2 %398 }
 0x313   : > { %659 = vrcp.f32 %v399_v7  ;;  %v411_v17 = vand.u32 2147483648, %v399_v7  ;;  %v409_v19 = vand.u32 2147483647, %v399_v7  ;;  %vm405_vm14 = vweird.f32 %v399_v7 }
 0x315   : > { %v412_v21 = vor.u32 1.1754944e-38, %v411_v17  ;;  %vm410_vm1 = vcmp.eq.f32.partialorder %v409_v19, 8.507059e+37 }
 0x319   : > { %v660_v11 = vpop.eup %659 }
 0x31a   : > { %v401_v12 = vmul.f32 %v660_v11, %v399_v7  ;;  %v332_v13 = vpop.permute.xlu2 %331  ;;  %vm406_vm13 = vweird.f32 %v660_v11 }
 0x31b   : > { %352 = vmatpush.msra.mxu3 %v332_v13  ;;  %vm407_vm15 = vmor %vm405_vm14, %vm406_vm13 }
 0x31c   : > { %v402_v16 = vsub.f32 1.0, %v401_v12  ;;  %622 = vmatmul.msk.f32.vlgmr.msra.gmra.mxu3 %vm203_vm0, %v329_v14 }
 0x31d   : > { %436 = vmatpush.msrb.mxu3 %v416_v15 }
 0x31e   : > { %v403_v18 = vmul.f32 %v660_v11, %v402_v16 }
 0x320   : > { %v404_v20 = vadd.f32 %v660_v11, %v403_v18 }
 0x322   : > { %v408_v22 = vsel %vm407_vm15, %v660_v11, %v404_v20 }
 0x323   : > { %v413_v23 = vsel %vm410_vm1, %v412_v21, %v408_v22 }
 0x324   : > { %v414_v24 = vmul.f32 %v654_v50, %v413_v23 }
 0x326   : > { %625 = vmatmul.msk.f32.vlgmr.msrb.gmra.mxu3 %vm203_vm0, %v414_v24 }
 0x331   : > { %v522_v25 = vpop.f32.mrf.mxu2 }
 0x332   : > { %526 = vrot.lane.b32.xlu1 %v522_v25, %s672_s30 }
 0x39f   : > { %v354_v26 = vpop.f32.mrf.mxu3 }
 0x3a0   : > { %358 = vrot.lane.b32.xlu2 %v354_v26, %s673_s4 }
 0x3a4   : > { %v527_v30 = vpop.permute.xlu1 %526 }
 0x3a9   : > { %v438_v27 = vpop.f32.mrf.mxu3 }
 0x3aa   : > { %442 = vrot.lane.b32.xlu0 %v438_v27, %s674_s5 }
 0x3fa   : > { %v359_v28 = vpop.permute.xlu2 %358 }
 0x3fb   : > { %362 = vst.msk [vmem:[%s749_s29] sm:$0xff] %vm361_vm2, %v359_v28 }
 0x41c   : > { %v443_v29 = vpop.permute.xlu0 %442 }
 0x41d   : > { %446 = vst.msk [vmem:[%s749_s29] sm:$0xff] %vm445_vm3, %v443_v29 }
 0x41e   : > { %530 = vst.msk [vmem:[%s749_s29] sm:$0xff] %vm529_vm4, %v527_v30 }
 0x41f PF: > { %s13_s12 = sadd.s32 1, %s667_s12  }
 0x420   : > { %p10_p4 = scmp.ge.s32.totalorder %s13_s12, 4  }
 0x422   :  { %12 = sbr.rel (!%p10_p4) target bundleno = 1 (0x1), region = 68 }

// kernel: transformer_block_forward.6
= control target key start
LH: loop header
LB: loop body
LE: loop exit
PB: predicated region body
PF: predicated region fallthrough
CT: control target
= control target key end

     0   :  { %vm25_vm0 = vcmask 261120   ;;  %v110_v8 = vmov 32.0   ;;  %s179_s0 = inlined_call_operand.vmem [shape: f32[16,32], index: 0, kind: input, shape index: {}]   ;;  %s180_s1 = inlined_call_operand.vmem [shape: f32[16,32], index: 1, kind: input, shape index: {}]   ;;  %s181_s4 = inlined_call_operand.vmem [shape: f32[16,32], index: 4, kind: output, shape index: {0}]   ;;  %s182_s2 = inlined_call_operand.vmem [shape: f32[1,32], index: 2, kind: input, shape index: {}]   ;;  %s183_s3 = inlined_call_operand.vmem [shape: f32[1,32], index: 3, kind: input, shape index: {}]   ;;  %s184_s5 = inlined_call_operand.vmem [shape: f32[16,32], index: 5, kind: output, shape index: {1}]  }
   0x1   :  { %v19_v0 = vld [vmem:[%s179_s0] sm:$0xff]  ;;  %v20_v2 = vld [vmem:[%s179_s0 + $0x8] sm:$0xff]  ;;  %104 = vrcp.f32 %v110_v8 }
   0x2   :  { %v21_v1 = vld [vmem:[%s180_s1] sm:$0xff]  ;;  %v22_v4 = vld [vmem:[%s180_s1 + $0x8] sm:$0xff] }
   0x3   :  { %v23_v3 = vadd.f32 %v21_v1, %v19_v0  ;;  %v24_v5 = vadd.f32 %v22_v4, %v20_v2  ;;  %v102_v39 = vld [vmem:[%s182_s2] ss:$0 sm:$0xff] }
   0x4   :  { %v103_v42 = vld [vmem:[%s183_s3] ss:$0 sm:$0xff] }
   0x5   :  { %v30_v6 = vsel %vm25_vm0, %v23_v3, 0.0  ;;  %26 = vst.msk [vmem:[%s181_s4] sm:$0xff] %vm25_vm0, %v23_v3  ;;  %v33_v7 = vsel %vm25_vm0, %v24_v5, 0.0 }
   0x6   :  { %31 = vadd.xlane.f32.xlu0 %v30_v6  ;;  %27 = vst.msk [vmem:[%s181_s4 + $0x8] sm:$0xff] %vm25_vm0, %v24_v5 }
   0x7   :  { %v105_v9 = vpop.eup %104 }
   0x8   :  { %v37_v10 = vmul.f32 32.0, %v105_v9  ;;  %vm41_vm1 = vweird.f32 %v105_v9 }
   0xa   :  { %v38_v11 = vsub.f32 1.0, %v37_v10 }
   0xc   :  { %v39_v12 = vmul.f32 %v105_v9, %v38_v11 }
   0xe   :  { %34 = vadd.xlane.f32.xlu0 %v33_v7  ;;  %v40_v13 = vadd.f32 %v105_v9, %v39_v12 }
  0x10   :  { %v42_v14 = vsel %vm41_vm1, %v105_v9, %v40_v13 }
  0x79   :  { %v32_v15 = vpop.xlane.xlu0 %31 }
  0x7a   :  { %v43_v16 = vmul.f32 %v42_v14, %v32_v15 }
  0x7c   :  { %v45_v17 = vsub.f32 %v23_v3, %v43_v16 }
  0x7e   :  { %v47_v18 = vmul.f32 %v45_v17, %v45_v17 }
  0x80   :  { %v49_v19 = vsel %vm25_vm0, %v47_v18, 0.0 }
  0x81   :  { %50 = vadd.xlane.f32.xlu1 %v49_v19  ;;  %v35_v20 = vpop.xlane.xlu0 %34 }
  0x82   :  { %v44_v21 = vmul.f32 %v42_v14, %v35_v20 }
  0x84   :  { %v46_v22 = vsub.f32 %v24_v5, %v44_v21 }
  0x86   :  { %v48_v23 = vmul.f32 %v46_v22, %v46_v22 }
  0x88   :  { %v52_v24 = vsel %vm25_vm0, %v48_v23, 0.0 }
  0x89   :  { %53 = vadd.xlane.f32.xlu1 %v52_v24 }
  0xf4   :  { %v51_v25 = vpop.xlane.xlu1 %50 }
  0xf5   :  { %v55_v26 = vmul.f32 %v51_v25, %v42_v14 }
  0xf7   :  { %v57_v27 = vadd.f32 1e-05, %v55_v26 }
  0xf9   :  { %106 = vrsqrt.f32 %v57_v27  ;;  %vm65_vm3 = vweird.f32 %v57_v27 }
  0xfc   :  { %v54_v28 = vpop.xlane.xlu1 %53 }
  0xfd   :  { %v56_v29 = vmul.f32 %v54_v28, %v42_v14 }
  0xff   :  { %v107_v30 = vpop.eup %106  ;;  %v58_v31 = vadd.f32 1e-05, %v56_v29 }
 0x100   :  { %v60_v32 = vmul.f32 %v107_v30, %v57_v27  ;;  %vm66_vm2 = vweird.f32 %v107_v30 }
 0x101   :  { %108 = vrsqrt.f32 %v58_v31  ;;  %vm67_vm4 = vmor %vm65_vm3, %vm66_vm2  ;;  %vm75_vm6 = vweird.f32 %v58_v31 }
 0x102   :  { %v61_v33 = vmul.f32 %v107_v30, %v60_v32 }
 0x104   :  { %v62_v34 = vmul.f32 0.5, %v61_v33 }
 0x106   :  { %v63_v35 = vsub.f32 1.5, %v62_v34 }
 0x107   :  { %v109_v36 = vpop.eup %108 }
 0x108   :  { %v64_v37 = vmul.f32 %v107_v30, %v63_v35  ;;  %v70_v38 = vmul.f32 %v109_v36, %v58_v31  ;;  %vm76_vm5 = vweird.f32 %v109_v36 }
 0x109   :  { %vm77_vm7 = vmor %vm75_vm6, %vm76_vm5 }
 0x10a   :  { %v68_v40 = vsel %vm67_vm4, %v107_v30, %v64_v37  ;;  %v71_v41 = vmul.f32 %v109_v36, %v70_v38 }
 0x10b   :  { %v79_v43 = vmul.f32 %v68_v40, %v45_v17 }
 0x10c   :  { %v72_v44 = vmul.f32 0.5, %v71_v41 }
 0x10d   :  { %v84_v45 = vmul.f32 %v102_v39, %v79_v43 }
 0x10e   :  { %v73_v46 = vsub.f32 1.5, %v72_v44 }
 0x10f   :  { %v89_v47 = vadd.f32 %v103_v42, %v84_v45 }
 0x110   :  { %v74_v48 = vmul.f32 %v109_v36, %v73_v46 }
 0x111   :  { %91 = vst.msk [vmem:[%s184_s5] sm:$0xff] %vm25_vm0, %v89_v47 }
 0x112   :  { %v78_v49 = vsel %vm77_vm7, %v109_v36, %v74_v48 }
 0x113   :  { %v80_v50 = vmul.f32 %v78_v49, %v46_v22 }
 0x115   :  { %v85_v51 = vmul.f32 %v102_v39, %v80_v50 }
 0x117   :  { %v90_v52 = vadd.f32 %v103_v42, %v85_v51 }
 0x119   :  { %92 = vst.msk [vmem:[%s184_s5 + $0x8] sm:$0xff] %vm25_vm0, %v90_v52 }

// kernel: transformer_block_forward.7
= control target key start
LH: loop header
LB: loop body
LE: loop exit
PB: predicated region body
PF: predicated region fallthrough
CT: control target
= control target key end

     0   :  { %s279_s0 = inlined_call_operand.vmem [shape: f32[16,32], index: 0, kind: input, shape index: {}]   ;;  %s280_s1 = inlined_call_operand.vmem [shape: f32[16,32], index: 1, kind: input, shape index: {}]   ;;  %s281_s2 = inlined_call_operand.vmem [shape: f32[32,32], index: 2, kind: input, shape index: {}]   ;;  %s282_s3 = inlined_call_operand.vmem [shape: f32[1,32], index: 3, kind: input, shape index: {}]   ;;  %s283_s4 = inlined_call_operand.vmem [shape: f32[32,32], index: 4, kind: input, shape index: {}]   ;;  %s284_s5 = inlined_call_operand.vmem [shape: f32[1,32], index: 5, kind: input, shape index: {}]   ;;  %s285_s6 = inlined_call_operand.hbm [shape: f32[16,32], index: 6, kind: output, shape index: {}]  }
   0x1   :  { %v29_v0 = vld [vmem:[%s281_s2 + $0x18] sm:$0xff]  ;;  %v28_v1 = vld [vmem:[%s281_s2 + $0x10] sm:$0xff]  ;;  %v27_v2 = vld [vmem:[%s281_s2 + $0x8] sm:$0xff] }
   0x2   :  { %53 = vmatpush.msra.mxu0 %v29_v0  ;;  %147 = vmatpush.msra.mxu2 %v29_v0 }
   0x4   :  { %54 = vmatpush.msra.mxu0 %v28_v1  ;;  %148 = vmatpush.msra.mxu2 %v28_v1 }
   0x5   :  { %11 = vsyncpa [#allocation3], 0  ;;  %v26_v3 = vld [vmem:[%s281_s2] sm:$0xff]  ;;  %vm34_vm0 = vcmask 261120   ;;  %v25_v5 = vld [vmem:[%s279_s0 + $0x8] sm:$0xff]  ;;  %s190_s19 = smov [#allocation2]  }
   0x6   :  { %55 = vmatpush.msra.mxu0 %v27_v2  ;;  %149 = vmatpush.msra.mxu2 %v27_v2  ;;  %v24_v4 = vld [vmem:[%s279_s0] sm:$0xff]  ;;  %v85_v6 = vld [vmem:[%s283_s4 + $0x18] sm:$0xff]  ;;  %v84_v7 = vld [vmem:[%s283_s4 + $0x10] sm:$0xff]  ;;  %s129_s20 = sshll.u32 %s190_s19, 4  ;;  %s131_s23 = sshll.u32 %s285_s6, 4  ;;  %s130_s20 = int_to_ptr.vmem [resolvable:$true] %s129_s20  ;;  %s132_s23 = int_to_ptr.hbm [resolvable:$true] %s131_s23 }
   0x7   :  { %108 = vmatpush.msra.mxu1 %v85_v6  ;;  %151 = vmatpush.msra.mxu3 %v85_v6  ;;  %v83_v8 = vld [vmem:[%s283_s4 + $0x8] sm:$0xff]  ;;  %v82_v9 = vld [vmem:[%s283_s4] sm:$0xff]  ;;  %s192_s26 = smov 8  }
   0x8   :  { %56 = vmatpush.msra.mxu0 %v26_v3  ;;  %150 = vmatpush.msra.mxu2 %v26_v3  ;;  %v158_v10 = vld [vmem:[%s282_s3] ss:$0 sm:$0xff]  ;;  %v120_v39 = vld [vmem:[%s280_s1 + $0x8] sm:$0xff] }
   0x9   :  { %143 = vmatmul.msk.f32.vlgmr.msra.gmra.mxu0 %vm34_vm0, %v24_v4  ;;  %144 = vmatmul.msk.f32.vlgmr.msra.gmra.mxu2 %vm34_vm0, %v25_v5  ;;  %v159_v33 = vld [vmem:[%s284_s5] ss:$0 sm:$0xff]  ;;  %s191_s5 = smov 128  }
   0xa   :  { %109 = vmatpush.msra.mxu1 %v84_v7  ;;  %152 = vmatpush.msra.mxu3 %v84_v7  ;;  %v119_v35 = vld [vmem:[%s280_s1] sm:$0xff] }
   0xc   :  { %110 = vmatpush.msra.mxu1 %v83_v8  ;;  %153 = vmatpush.msra.mxu3 %v83_v8 }
   0xe   :  { %111 = vmatpush.msra.mxu1 %v82_v9  ;;  %154 = vmatpush.msra.mxu3 %v82_v9 }
  0x86   :  { %v58_v11 = vpop.f32.mrf.mxu0 }
  0x87   :  { %v59_v12 = vadd.f32 %v158_v10, %v58_v11 }
  0x89   :  { %v66_v13 = vmul.f32 0.044715, %v59_v12  ;;  %v64_v26 = vmul.f32 0.5, %v59_v12 }
  0x8b   :  { %v68_v14 = vmul.f32 %v66_v13, %v59_v12 }
  0x8c   :  { %v61_v15 = vpop.f32.mrf.mxu2 }
  0x8d   :  { %v62_v16 = vadd.f32 %v158_v10, %v61_v15  ;;  %v70_v17 = vmul.f32 %v68_v14, %v59_v12 }
  0x8f   :  { %v67_v18 = vmul.f32 0.044715, %v62_v16  ;;  %v72_v19 = vadd.f32 %v70_v17, %v59_v12  ;;  %v65_v30 = vmul.f32 0.5, %v62_v16 }
  0x91   :  { %v74_v20 = vmul.f32 0.7978846, %v72_v19  ;;  %v69_v21 = vmul.f32 %v67_v18, %v62_v16 }
  0x93   :  { %160 = vtanh.f32 %v74_v20  ;;  %v71_v22 = vmul.f32 %v69_v21, %v62_v16 }
  0x95   :  { %v73_v23 = vadd.f32 %v71_v22, %v62_v16 }
  0x97   :  { %v75_v24 = vmul.f32 0.7978846, %v73_v23 }
  0x99   :  { %v161_v25 = vpop.eup %160  ;;  %162 = vtanh.f32 %v75_v24 }
  0x9a   :  { %v78_v27 = vadd.f32 1.0, %v161_v25 }
  0x9c   :  { %v80_v28 = vmul.f32 %v78_v27, %v64_v26 }
  0x9e   :  { %145 = vmatmul.msk.f32.vlgmr.msra.gmra.mxu1 %vm34_vm0, %v80_v28 }
  0x9f   :  { %v163_v29 = vpop.eup %162 }
  0xa0   :  { %v79_v31 = vadd.f32 1.0, %v163_v29 }
  0xa2   :  { %v81_v32 = vmul.f32 %v79_v31, %v65_v30 }
  0xa4   :  { %146 = vmatmul.msk.f32.vlgmr.msra.gmra.mxu3 %vm34_vm0, %v81_v32 }
 0x11b   :  { %v113_v34 = vpop.f32.mrf.mxu1 }
 0x11c   :  { %v114_v36 = vadd.f32 %v159_v33, %v113_v34 }
 0x11e   :  { %v121_v37 = vadd.f32 %v119_v35, %v114_v36 }
 0x120   :  { %123 = vst.msk [vmem:[#allocation2] sm:$0xff] %vm34_vm0, %v121_v37 }
 0x127   :  { %v116_v38 = vpop.f32.mrf.mxu3 }
 0x128   :  { %v117_v40 = vadd.f32 %v159_v33, %v116_v38 }
 0x12a   :  { %v122_v41 = vadd.f32 %v120_v39, %v117_v40 }
 0x12c   :  { %124 = vst.msk [vmem:[#allocation2 + $0x8] sm:$0xff] %vm34_vm0, %v122_v41 }
 0x12d   :  { %137 = dma.vmem_to_hbm [thread:$0]  %s130_s20, 256, %s132_s23, [#allocation3], %s191_s5, %s191_s5, %s192_s26  }
 0x12e   :  { %188 = dma.done.wait [#allocation3], 256  }
 0x12f   :  { %189 = vsyncadd [#allocation3], 4294967040 }
 0x130   :  { %142 = vsyncpa [#allocation3], 1 }

</bundles_post_ra>
